<compile_context>
chip_gen: v7x
topology: tpu7x:2x2x1
jax: 0.10.0
libtpu: 0.0.40
codegen_flags: <defaults>
</compile_context>

<pallas_src>
import functools

import jax
import jax.numpy as jnp
from jax.experimental import pallas as pl
from jax.experimental.pallas import tpu as pltpu


HIDDEN_SIZES = [256, 256, 128, 64]
BN_EPS = 1e-5
_DEFAULT_TILE_B = 1024  # large tile => per-step grid overhead amortized (v5e/v6e)


def _round_up(n, m):
    return ((n + m - 1) // m) * m


def _value_net_kernel(
    x_ref,
    w_in_ref, b_in_ref,          # state_dim -> 256 (BN pre-folded on host)
    w_h1_ref, b_h1_ref,          # 256 -> 256 (identity skip)
    w_b2_ref, b_b2_ref,          # 256 -> [128 main | 128 skip] fused
    w_b3_ref, b_b3_ref,          # 128 -> [64 main | 1 folded-skip column] fused
    w_out_ref, b_out_ref,        # (1, 65) extended output row + (1, 1) bias
    out_ref,
    *, h2: int, h3: int, mxu_dtype,
):
    f32 = jnp.float32

    def dot(a, w_ref):
        # MXU operands in mxu_dtype (bf16 by default), f32 accumulation.
        return jnp.dot(a.astype(mxu_dtype), w_ref[...], preferred_element_type=f32)

    x = x_ref[...]

    # input layer (BatchNorm already folded into w_in/b_in when batch > 1)
    h = jnp.maximum(dot(x, w_in_ref) + b_in_ref[...], 0.0)

    # block 1: 256 -> 256, ReLU, identity skip (all VPU math in f32)
    h = jnp.maximum(dot(h, w_h1_ref) + b_h1_ref[...], 0.0) + h

    # block 2: one fused 256x256 matmul = [main(256->128) | skip(256->128)]
    # split at lane 128 == vreg boundary -> no cross-lane shuffle
    y = dot(h, w_b2_ref) + b_b2_ref[...]
    h = jnp.maximum(y[:, :h2], 0.0) + y[:, h2:]

    # block 3 + output head, fused:
    #   y[:, :h3]  = main pre-ReLU (128 -> 64)
    #   y[:,  h3]  = block-3 skip already folded through w_out on the host
    # Masked ReLU (VPU select, no lane movement) then a single XLU reduce.
    y = dot(h, w_b3_ref) + b_b3_ref[...]                       # (tile_b, h3 + 1)
    lane = jax.lax.broadcasted_iota(jnp.int32, y.shape, 1)
    y = jnp.where(lane < h3, jnp.maximum(y, 0.0), y)
    out_ref[...] = jnp.sum(y * w_out_ref[...], axis=-1, keepdims=True) + b_out_ref[...]


def value_network_forward(x, params, *, tile_b=None, mxu_dtype=jnp.bfloat16):
    """Full ValueNetwork forward in one Pallas call, batch-tiled over a grid.

    x: (batch, state_dim) float32.
    params: dict from init_params (weights stored as (in_features, out_features)).
    mxu_dtype: jnp.bfloat16 (default; ~2-4x MXU throughput on all gens, validate
               at ~1e-2 tolerance) or jnp.float32 for bit-tight results.
    """
    batch, state_dim = x.shape
    h0, h1, h2, h3 = HIDDEN_SIZES
    apply_bn = batch > 1  # static, mirrors `if x.size(0) > 1`

    # ---- host-side folding / fusion of parameters (kept in f32) ----
    w_in, b_in = params["w_in"], params["b_in"]
    if apply_bn:
        s = params["bn_gamma"] * jax.lax.rsqrt(params["bn_var"] + BN_EPS)  # (1, D)
        t = params["bn_beta"] - params["bn_mean"] * s                      # (1, D)
        w_in = w_in * s.reshape(-1, 1)
        b_in = b_in + t @ params["w_in"]   # uses the ORIGINAL (unscaled) w_in

    # block-2 skip fused as extra output columns of one 256x256 matmul
    w_b2 = jnp.concatenate([params["w_h2"], params["w_s2"]], axis=1)  # (256, 256)
    b_b2 = jnp.concatenate([params["b_h2"], params["b_s2"]], axis=1)  # (1, 256)

    # block-3 skip folded THROUGH the output layer:
    #   (relu(main) + skip) @ w_out + b_out
    # = relu(main) @ w_out + h @ (w_s3 @ w_out) + (b_s3 @ w_out) + b_out
    w_out_col = params["w_out"]                                       # (64, 1)
    w_b3 = jnp.concatenate([params["w_h3"], params["w_s3"] @ w_out_col], axis=1)   # (128, 65)
    b_b3 = jnp.concatenate([params["b_h3"], params["b_s3"] @ w_out_col], axis=1)   # (1, 65)
    w_out_ext = jnp.concatenate(
        [w_out_col.reshape(1, h3), jnp.ones((1, 1), jnp.float32)], axis=1)         # (1, 65)
    b_out = params["b_out"]                                                        # (1, 1)

    # Only MXU operands go to mxu_dtype; biases / head row stay f32 (VPU math).
    w_in = w_in.astype(mxu_dtype)
    w_h1 = params["w_h1"].astype(mxu_dtype)
    w_b2 = w_b2.astype(mxu_dtype)
    w_b3 = w_b3.astype(mxu_dtype)

    # ---- batch tiling ----
    if tile_b is None:
        if batch <= 8:
            tile_b = batch                       # single full-extent block
        else:
            # >= 2 grid steps so "parallel" can shard across v7x's two TCs;
            # capped at _DEFAULT_TILE_B for per-step-overhead amortization.
            tile_b = min(_DEFAULT_TILE_B, _round_up(pl.cdiv(batch, 2), 8))
    else:
        tile_b = max(1, int(tile_b))
        if tile_b < batch:
            tile_b = _round_up(tile_b, 8)        # (8,128) block-shape constraint
        else:
            tile_b = batch

    pad = (-batch) % tile_b
    x_in = jnp.pad(x, ((0, pad), (0, 0))) if pad else x
    padded_batch = batch + pad
    grid = (padded_batch // tile_b,)

    def resident(arr):  # weights/biases: DMA'd once, VMEM-resident across the grid
        # (pipeline_mode=pl.Buffered(1) would halve their double-buffer footprint,
        #  but at <1.5 MiB total it is not a lever here.)
        return pl.BlockSpec(arr.shape, lambda i: (0, 0))

    weight_args = (w_in, b_in, w_h1, params["b_h1"], w_b2, b_b2, w_b3, b_b3,
                   w_out_ext, b_out)

    in_specs = [pl.BlockSpec((tile_b, state_dim), lambda i: (i, 0))]  # streaming x tile
    in_specs += [resident(w) for w in weight_args]
    out_spec = pl.BlockSpec((tile_b, 1), lambda i: (i, 0))

    # Advisory cost estimate so XLA can schedule/overlap the custom call.
    flops = 2 * padded_batch * (state_dim * h0 + h0 * h1 + h1 * (2 * h2) + h2 * (h3 + 1)) \
        + 4 * padded_batch * (h3 + 1)
    bytes_accessed = (x_in.size * x_in.dtype.itemsize
                      + sum(int(w.size) * w.dtype.itemsize for w in weight_args)
                      + padded_batch * 4)
    cost = pl.CostEstimate(flops=flops, transcendentals=0, bytes_accessed=bytes_accessed)

    out = pl.pallas_call(
        functools.partial(_value_net_kernel, h2=h2, h3=h3, mxu_dtype=mxu_dtype),
        out_shape=jax.ShapeDtypeStruct((padded_batch, 1), jnp.float32),
        grid=grid,
        in_specs=in_specs,
        out_specs=out_spec,
        compiler_params=pltpu.CompilerParams(dimension_semantics=("parallel",)),
        cost_estimate=cost,
    )(x_in, *weight_args)

    return out[:batch] if pad else out


def init_params(state_dim, key):
    """Deterministic synthetic parameters (shapes match the PyTorch module)."""
    h = HIDDEN_SIZES
    keys = jax.random.split(key, 16)

    def lin(k, fan_in, fan_out):
        bound = 1.0 / jnp.sqrt(jnp.float32(fan_in))
        kw, kb = jax.random.split(k)
        w = jax.random.uniform(kw, (fan_in, fan_out), jnp.float32, -bound, bound)
        b = jax.random.uniform(kb, (1, fan_out), jnp.float32, -bound, bound)
        return w, b

    params = {}
    params["bn_gamma"] = jnp.ones((1, state_dim), jnp.float32)
    params["bn_beta"] = jnp.zeros((1, state_dim), jnp.float32)
    params["bn_mean"] = 0.1 * jax.random.normal(keys[0], (1, state_dim), jnp.float32)
    params["bn_var"] = jnp.abs(jax.random.normal(keys[1], (1, state_dim), jnp.float32)) + 0.5

    params["w_in"], params["b_in"] = lin(keys[2], state_dim, h[0])
    params["w_h1"], params["b_h1"] = lin(keys[3], h[0], h[1])   # 256->256, Identity skip
    params["w_h2"], params["b_h2"] = lin(keys[4], h[1], h[2])   # 256->128
    params["w_s2"], params["b_s2"] = lin(keys[5], h[1], h[2])   # skip 256->128
    params["w_h3"], params["b_h3"] = lin(keys[6], h[2], h[3])   # 128->64
    params["w_s3"], params["b_s3"] = lin(keys[7], h[2], h[3])   # skip 128->64
    params["w_out"], params["b_out"] = lin(keys[8], h[3], 1)
    return params


def value_network_reference(x, params):
    """Pure-JAX reference with the original (unfused) eval-mode math."""
    if x.shape[0] > 1:
        x = (x - params["bn_mean"]) * jax.lax.rsqrt(params["bn_var"] + BN_EPS) \
            * params["bn_gamma"] + params["bn_beta"]
    h = jax.nn.relu(x @ params["w_in"] + params["b_in"])
    h = jax.nn.relu(h @ params["w_h1"] + params["b_h1"]) + h
    r = h
    h = jax.nn.relu(h @ params["w_h2"] + params["b_h2"]) + (r @ params["w_s2"] + params["b_s2"])
    r = h
    h = jax.nn.relu(h @ params["w_h3"] + params["b_h3"]) + (r @ params["w_s3"] + params["b_s3"])
    return h @ params["w_out"] + params["b_out"]


if __name__ == "__main__":
    key = jax.random.PRNGKey(0)
    k_x, k_x1, k_x2, k_p = jax.random.split(key, 4)

    state_dim = 16
    params = init_params(state_dim, k_p)

    # 1) Default path: bf16 MXU operands, auto tile -> tile_b=16, grid=(2,)
    #    (two grid steps so v7x megacore sharding actually engages).
    batch = 32
    x = jax.random.normal(k_x, (batch, state_dim), jnp.float32)
    out = jax.block_until_ready(value_network_forward(x, params))
    ref = value_network_reference(x, params)
    assert out.shape == (batch, 1)
    assert jnp.allclose(out, ref, atol=3e-2, rtol=3e-2)

    # 2) f32 MXU path with an explicit small tile (grid=(4,)): bit-tight check.
    out32 = jax.block_until_ready(
        value_network_forward(x, params, tile_b=8, mxu_dtype=jnp.float32))
    assert jnp.allclose(out32, ref, atol=1e-4, rtol=1e-4)

    # 3) Non-multiple batch exercises the padding path (f32 for a strict check).
    batch2 = 37
    x2 = jax.random.normal(k_x2, (batch2, state_dim), jnp.float32)
    out2 = jax.block_until_ready(
        value_network_forward(x2, params, mxu_dtype=jnp.float32))
    ref2 = value_network_reference(x2, params)
    assert out2.shape == (batch2, 1)
    assert jnp.allclose(out2, ref2, atol=1e-4, rtol=1e-4)

    # 4) batch == 1 path: BatchNorm skipped, single full-extent block.
    x1 = jax.random.normal(k_x1, (1, state_dim), jnp.float32)
    out1 = jax.block_until_ready(
        value_network_forward(x1, params, mxu_dtype=jnp.float32))
    ref1 = value_network_reference(x1, params)
    assert out1.shape == (1, 1)
    assert jnp.allclose(out1, ref1, atol=1e-4, rtol=1e-4)

    print("KERNEL_OK")
</pallas_src>

<mosaic_0001>
module attributes {stable_mosaic.version = 11 : i64} {
  func.func @_value_net_kernel(%arg0: i32, %arg1: memref<16x16xf32, #tpu.memory_space<vmem>>, %arg2: memref<16x256xbf16, #tpu.memory_space<vmem>>, %arg3: memref<1x256xf32, #tpu.memory_space<vmem>>, %arg4: memref<256x256xbf16, #tpu.memory_space<vmem>>, %arg5: memref<1x256xf32, #tpu.memory_space<vmem>>, %arg6: memref<256x256xbf16, #tpu.memory_space<vmem>>, %arg7: memref<1x256xf32, #tpu.memory_space<vmem>>, %arg8: memref<128x65xbf16, #tpu.memory_space<vmem>>, %arg9: memref<1x65xf32, #tpu.memory_space<vmem>>, %arg10: memref<1x65xf32, #tpu.memory_space<vmem>>, %arg11: memref<1x1xf32, #tpu.memory_space<vmem>>, %arg12: memref<16x1xf32, #tpu.memory_space<vmem>>) attributes {dimension_semantics = [#tpu.dimension_semantics<parallel>], iteration_bounds = array<i64: 2>, scalar_prefetch = 0 : i64, scratch_operands = 0 : i64, tpu.core_type = #tpu.core_type<tc>, window_params = [{transform_indices = @transform_0, window_bounds = array<i64: 16, 16>}, {pipeline_mode = #tpu.pipeline_mode<synchronous>, transform_indices = @transform_1, window_bounds = array<i64: 16, 256>}, {pipeline_mode = #tpu.pipeline_mode<synchronous>, transform_indices = @transform_2, window_bounds = array<i64: 1, 256>}, {pipeline_mode = #tpu.pipeline_mode<synchronous>, transform_indices = @transform_3, window_bounds = array<i64: 256, 256>}, {pipeline_mode = #tpu.pipeline_mode<synchronous>, transform_indices = @transform_4, window_bounds = array<i64: 1, 256>}, {pipeline_mode = #tpu.pipeline_mode<synchronous>, transform_indices = @transform_5, window_bounds = array<i64: 256, 256>}, {pipeline_mode = #tpu.pipeline_mode<synchronous>, transform_indices = @transform_6, window_bounds = array<i64: 1, 256>}, {pipeline_mode = #tpu.pipeline_mode<synchronous>, transform_indices = @transform_7, window_bounds = array<i64: 128, 65>}, {pipeline_mode = #tpu.pipeline_mode<synchronous>, transform_indices = @transform_8, window_bounds = array<i64: 1, 65>}, {pipeline_mode = #tpu.pipeline_mode<synchronous>, transform_indices = @transform_9, window_bounds = array<i64: 1, 65>}, {pipeline_mode = #tpu.pipeline_mode<synchronous>, transform_indices = @transform_10, window_bounds = array<i64: 1, 1>}, {transform_indices = @transform_11, window_bounds = array<i64: 16, 1>}]} {
    %c0 = arith.constant 0 : index
    %c0_0 = arith.constant 0 : index
    %0 = vector.load %arg1[%c0, %c0_0] : memref<16x16xf32, #tpu.memory_space<vmem>>, vector<16x16xf32>
    %1 = arith.truncf %0 : vector<16x16xf32> to vector<16x16xbf16>
    %c0_1 = arith.constant 0 : index
    %c0_2 = arith.constant 0 : index
    %2 = vector.load %arg2[%c0_1, %c0_2] : memref<16x256xbf16, #tpu.memory_space<vmem>>, vector<16x256xbf16>
    %cst = arith.constant dense<0.000000e+00> : vector<16x256xf32>
    %3 = tpu.matmul %1, %2, %cst {dimension_numbers = #tpu.dot_dimension_numbers<[1], [0], [0], [1], [0, 0, 1, 1], [], []>} : vector<16x16xbf16>, vector<16x256xbf16>, vector<16x256xf32> -> vector<16x256xf32>
    %c0_3 = arith.constant 0 : index
    %c0_4 = arith.constant 0 : index
    %4 = vector.load %arg3[%c0_3, %c0_4] : memref<1x256xf32, #tpu.memory_space<vmem>>, vector<1x256xf32>
    %5 = vector.broadcast %4 : vector<1x256xf32> to vector<16x256xf32>
    %6 = arith.addf %3, %5 : vector<16x256xf32>
    %cst_5 = arith.constant 0.000000e+00 : f32
    %7 = vector.broadcast %cst_5 : f32 to vector<16x256xf32>
    %8 = arith.maximumf %6, %7 : vector<16x256xf32>
    %9 = arith.truncf %8 : vector<16x256xf32> to vector<16x256xbf16>
    %c0_6 = arith.constant 0 : index
    %c0_7 = arith.constant 0 : index
    %10 = vector.load %arg4[%c0_6, %c0_7] : memref<256x256xbf16, #tpu.memory_space<vmem>>, vector<256x256xbf16>
    %cst_8 = arith.constant dense<0.000000e+00> : vector<16x256xf32>
    %11 = tpu.matmul %9, %10, %cst_8 {dimension_numbers = #tpu.dot_dimension_numbers<[1], [0], [0], [1], [0, 0, 1, 1], [], []>} : vector<16x256xbf16>, vector<256x256xbf16>, vector<16x256xf32> -> vector<16x256xf32>
    %c0_9 = arith.constant 0 : index
    %c0_10 = arith.constant 0 : index
    %12 = vector.load %arg5[%c0_9, %c0_10] : memref<1x256xf32, #tpu.memory_space<vmem>>, vector<1x256xf32>
    %13 = vector.broadcast %12 : vector<1x256xf32> to vector<16x256xf32>
    %14 = arith.addf %11, %13 : vector<16x256xf32>
    %cst_11 = arith.constant 0.000000e+00 : f32
    %15 = vector.broadcast %cst_11 : f32 to vector<16x256xf32>
    %16 = arith.maximumf %14, %15 : vector<16x256xf32>
    %17 = arith.addf %16, %8 : vector<16x256xf32>
    %18 = arith.truncf %17 : vector<16x256xf32> to vector<16x256xbf16>
    %c0_12 = arith.constant 0 : index
    %c0_13 = arith.constant 0 : index
    %19 = vector.load %arg6[%c0_12, %c0_13] : memref<256x256xbf16, #tpu.memory_space<vmem>>, vector<256x256xbf16>
    %cst_14 = arith.constant dense<0.000000e+00> : vector<16x256xf32>
    %20 = tpu.matmul %18, %19, %cst_14 {dimension_numbers = #tpu.dot_dimension_numbers<[1], [0], [0], [1], [0, 0, 1, 1], [], []>} : vector<16x256xbf16>, vector<256x256xbf16>, vector<16x256xf32> -> vector<16x256xf32>
    %c0_15 = arith.constant 0 : index
    %c0_16 = arith.constant 0 : index
    %21 = vector.load %arg7[%c0_15, %c0_16] : memref<1x256xf32, #tpu.memory_space<vmem>>, vector<1x256xf32>
    %22 = vector.broadcast %21 : vector<1x256xf32> to vector<16x256xf32>
    %23 = arith.addf %20, %22 : vector<16x256xf32>
    %24 = vector.extract_strided_slice %23 {offsets = [0, 0], sizes = [16, 128], strides = [1, 1]} : vector<16x256xf32> to vector<16x128xf32>
    %cst_17 = arith.constant 0.000000e+00 : f32
    %25 = vector.broadcast %cst_17 : f32 to vector<16x128xf32>
    %26 = arith.maximumf %24, %25 : vector<16x128xf32>
    %27 = vector.extract_strided_slice %23 {offsets = [0, 128], sizes = [16, 128], strides = [1, 1]} : vector<16x256xf32> to vector<16x128xf32>
    %28 = arith.addf %26, %27 : vector<16x128xf32>
    %29 = arith.truncf %28 : vector<16x128xf32> to vector<16x128xbf16>
    %c0_18 = arith.constant 0 : index
    %c0_19 = arith.constant 0 : index
    %30 = vector.load %arg8[%c0_18, %c0_19] : memref<128x65xbf16, #tpu.memory_space<vmem>>, vector<128x65xbf16>
    %cst_20 = arith.constant dense<0.000000e+00> : vector<16x65xf32>
    %31 = tpu.matmul %29, %30, %cst_20 {dimension_numbers = #tpu.dot_dimension_numbers<[1], [0], [0], [1], [0, 0, 1, 1], [], []>} : vector<16x128xbf16>, vector<128x65xbf16>, vector<16x65xf32> -> vector<16x65xf32>
    %c0_21 = arith.constant 0 : index
    %c0_22 = arith.constant 0 : index
    %32 = vector.load %arg9[%c0_21, %c0_22] : memref<1x65xf32, #tpu.memory_space<vmem>>, vector<1x65xf32>
    %33 = vector.broadcast %32 : vector<1x65xf32> to vector<16x65xf32>
    %34 = arith.addf %31, %33 : vector<16x65xf32>
    %35 = tpu.iota {dimensions = array<i32: 1>} : vector<16x65xi32>
    %c64_i32 = arith.constant 64 : i32
    %36 = vector.broadcast %c64_i32 : i32 to vector<16x65xi32>
    %37 = arith.cmpi slt, %35, %36 : vector<16x65xi32>
    %cst_23 = arith.constant 0.000000e+00 : f32
    %38 = vector.broadcast %cst_23 : f32 to vector<16x65xf32>
    %39 = arith.maximumf %34, %38 : vector<16x65xf32>
    %40 = arith.select %37, %39, %34 : vector<16x65xi1>, vector<16x65xf32>
    %c0_24 = arith.constant 0 : index
    %c0_25 = arith.constant 0 : index
    %41 = vector.load %arg10[%c0_24, %c0_25] : memref<1x65xf32, #tpu.memory_space<vmem>>, vector<1x65xf32>
    %42 = vector.broadcast %41 : vector<1x65xf32> to vector<16x65xf32>
    %43 = arith.mulf %40, %42 : vector<16x65xf32>
    %cst_26 = arith.constant dense<0.000000e+00> : vector<16xf32>
    %44 = vector.multi_reduction <add>, %43, %cst_26 [1] : vector<16x65xf32> to vector<16xf32>
    %45 = vector.shape_cast %44 : vector<16xf32> to vector<16x1xf32>
    %c0_27 = arith.constant 0 : index
    %c0_28 = arith.constant 0 : index
    %46 = vector.load %arg11[%c0_27, %c0_28] : memref<1x1xf32, #tpu.memory_space<vmem>>, vector<1x1xf32>
    %47 = vector.broadcast %46 : vector<1x1xf32> to vector<16x1xf32>
    %48 = arith.addf %45, %47 : vector<16x1xf32>
    %c0_29 = arith.constant 0 : index
    %c0_30 = arith.constant 0 : index
    %49 = vector.load %arg12[%c0_29, %c0_30] : memref<16x1xf32, #tpu.memory_space<vmem>>, vector<16x1xf32>
    tpu.vector_store %arg12[%c0_29, %c0_30], %48 {strides = array<i32>} : memref<16x1xf32, #tpu.memory_space<vmem>>, vector<16x1xf32>,
    return
  }
  func.func @transform_0(%arg0: i32) -> (i32, i32) {
    %c0_i32 = arith.constant 0 : i32
    %c0_i32_0 = arith.constant 0 : i32
    return %arg0, %c0_i32 : i32, i32
  }
  func.func @transform_1(%arg0: i32) -> (i32, i32) {
    %c0_i32 = arith.constant 0 : i32
    %c0_i32_0 = arith.constant 0 : i32
    %c0_i32_1 = arith.constant 0 : i32
    return %c0_i32, %c0_i32_0 : i32, i32
  }
  func.func @transform_2(%arg0: i32) -> (i32, i32) {
    %c0_i32 = arith.constant 0 : i32
    %c0_i32_0 = arith.constant 0 : i32
    %c0_i32_1 = arith.constant 0 : i32
    return %c0_i32, %c0_i32_0 : i32, i32
  }
  func.func @transform_3(%arg0: i32) -> (i32, i32) {
    %c0_i32 = arith.constant 0 : i32
    %c0_i32_0 = arith.constant 0 : i32
    %c0_i32_1 = arith.constant 0 : i32
    return %c0_i32, %c0_i32_0 : i32, i32
  }
  func.func @transform_4(%arg0: i32) -> (i32, i32) {
    %c0_i32 = arith.constant 0 : i32
    %c0_i32_0 = arith.constant 0 : i32
    %c0_i32_1 = arith.constant 0 : i32
    return %c0_i32, %c0_i32_0 : i32, i32
  }
  func.func @transform_5(%arg0: i32) -> (i32, i32) {
    %c0_i32 = arith.constant 0 : i32
    %c0_i32_0 = arith.constant 0 : i32
    %c0_i32_1 = arith.constant 0 : i32
    return %c0_i32, %c0_i32_0 : i32, i32
  }
  func.func @transform_6(%arg0: i32) -> (i32, i32) {
    %c0_i32 = arith.constant 0 : i32
    %c0_i32_0 = arith.constant 0 : i32
    %c0_i32_1 = arith.constant 0 : i32
    return %c0_i32, %c0_i32_0 : i32, i32
  }
  func.func @transform_7(%arg0: i32) -> (i32, i32) {
    %c0_i32 = arith.constant 0 : i32
    %c0_i32_0 = arith.constant 0 : i32
    %c0_i32_1 = arith.constant 0 : i32
    return %c0_i32, %c0_i32_0 : i32, i32
  }
  func.func @transform_8(%arg0: i32) -> (i32, i32) {
    %c0_i32 = arith.constant 0 : i32
    %c0_i32_0 = arith.constant 0 : i32
    %c0_i32_1 = arith.constant 0 : i32
    return %c0_i32, %c0_i32_0 : i32, i32
  }
  func.func @transform_9(%arg0: i32) -> (i32, i32) {
    %c0_i32 = arith.constant 0 : i32
    %c0_i32_0 = arith.constant 0 : i32
    %c0_i32_1 = arith.constant 0 : i32
    return %c0_i32, %c0_i32_0 : i32, i32
  }
  func.func @transform_10(%arg0: i32) -> (i32, i32) {
    %c0_i32 = arith.constant 0 : i32
    %c0_i32_0 = arith.constant 0 : i32
    %c0_i32_1 = arith.constant 0 : i32
    return %c0_i32, %c0_i32_0 : i32, i32
  }
  func.func @transform_11(%arg0: i32) -> (i32, i32) {
    %c0_i32 = arith.constant 0 : i32
    %c0_i32_0 = arith.constant 0 : i32
    return %arg0, %c0_i32 : i32, i32
  }
}

</mosaic_0001>

<bundles_post_ra>
// kernel: tpu_custom_call.1
= control target key start
LH: loop header
LB: loop body
LE: loop exit
PB: predicated region body
PF: predicated region fallthrough
CT: control target
= control target key end

     0   :  { %s1802_s0 = inlined_call_operand.vmem [shape: f32[32,16], index: 0, kind: input, shape index: {}]   ;;  %s1803_s1 = inlined_call_operand.vmem [shape: bf16[16,256], index: 1, kind: input, shape index: {}]   ;;  %s1804_s2 = inlined_call_operand.vmem [shape: f32[1,256], index: 2, kind: input, shape index: {}]   ;;  %s1805_s3 = inlined_call_operand.hbm [shape: bf16[256,256], index: 3, kind: input, shape index: {}]   ;;  %s1806_s4 = inlined_call_operand.vmem [shape: f32[1,256], index: 4, kind: input, shape index: {}]   ;;  %s1807_s5 = inlined_call_operand.hbm [shape: bf16[256,256], index: 5, kind: input, shape index: {}]   ;;  %s1808_s6 = inlined_call_operand.vmem [shape: f32[1,256], index: 6, kind: input, shape index: {}]   ;;  %s1809_s7 = inlined_call_operand.vmem [shape: bf16[128,65], index: 7, kind: input, shape index: {}]   ;;  %s1810_s8 = inlined_call_operand.vmem [shape: f32[1,65], index: 8, kind: input, shape index: {}]   ;;  %s1811_s9 = inlined_call_operand.vmem [shape: f32[1,65], index: 9, kind: input, shape index: {}]   ;;  %s1812_s10 = inlined_call_operand.<no memory space> [shape: f32[1,1], index: 10, kind: input, shape index: {}]   ;;  %s1813_s11 = inlined_call_operand.vmem [shape: f32[32,1], index: 11, kind: output, shape index: {}]  }
   0x1   :  { %v16_v0 = vstv %s1812_s10 }
   0x2   :  { %17 = vst [vmem:[#allocation2] sm:$0x1] %v16_v0 }
   0x3   :  { %18 = vsyncpa [#allocation4], 0 }
   0x4   :  { %19 = vsyncpa [#allocation6], 0  ;;  %s1642_s19 = smov 0  }
   0x5 LB: > { %s1237_s20 = sadd.s32 4294967295, %s1570_s19   ;;  %p1239_p0 = scmp.ge.s32.totalorder %s1570_s19, 1  ;;  %s1570_s19 = sphi %s1642_s19, %s25_s19  }
   0x6   : > { %p292_p1 = scmp.lt.s32.totalorder %s1570_s19, 3  ;;  %s1572_s21 = smov [#allocation3]  }
   0x7   : > { %s310_s22 = sshll.u32 %s1572_s21, 4  ;;  %p1656_p3 = scmp.eq.s32.totalorder %s1237_s20, 0  ;;  %s311_s22 = int_to_ptr.vmem [resolvable:$true] %s310_s22 }
   0x8   : > { %p1650_p2 = pnand %p1239_p0, %p292_p1  ;;  %s1573_s24 = smov [#allocation5]  }
   0x9   : > { %s1818_s23 = scalar_select %p1656_p3, 1, 0 }
   0xa   : > { %s1817_s10 = scalar_select %p1650_p2, 1, 0 }
   0xb   : > { %p1367_p4 = pneg %p1650_p2  ;;  %s326_s25 = sshll.u32 %s1573_s24, 4  ;;  %s1668_s25 = int_to_ptr.vmem [resolvable:$true] %s326_s25 }
   0xc   : > { %s1500_s29 = scalar_lea.hbm %s1805_s3, 4096 }
   0xd   : > { %p1664_p5 = pnand %p1656_p3, %p1367_p4  ;;  %p1501_p6 = scmp.ne.s32.totalorder %s1805_s3, %s1500_s29 }
   0xe   : > { %p1507_p10 = scmp.lt.u32.totalorder %s1500_s29, %s1805_s3 }
   0xf   : > { %p1502_p7 = pneg %p1664_p5 }
  0x11   : > { %p1503_p8 = pnand %p1502_p7, %p1501_p6 }
  0x13   : > { %p1504_p9 = pneg %p1503_p8 }
  0x15   : > { %p1509_p11 = pnand %p1507_p10, %p1504_p9 }
  0x17   : > { %1512 = shalt.err (!%p1509_p11)
}
  0x18   : > { %s1513_s15 = scalar_lea.vmem %s311_s22, 4096  ;;  %p1521_p1 = scmp.lt.s32.totalorder %s311_s22, %s311_s22 }
  0x19   : > { %p1514_p12 = scmp.ne.s32.totalorder %s311_s22, %s1513_s15  ;;  %p1522_p4 = scmp.lt.s32.totalorder %s1513_s15, %s1513_s15 }
  0x1b   : > { %p1516_p13 = pnand %p1514_p12, %p1502_p7  ;;  %p1523_p3 = por %p1522_p4, %p1521_p1 }
  0x1d   : > { %p1517_p0 = pneg %p1516_p13 }
  0x1f   : > { %p1524_p2 = pnand %p1523_p3, %p1517_p0 }
  0x21   : > { %1527 = shalt.err (!%p1524_p2)
}
  0x22   : > { %s1574_s16 = smov 128   ;;  %s1575_s17 = smov 8  }
  0x23   : > { %1370 = dma.hbm_to_vmem [thread:$0]  (!%p1664_p5), %s1805_s3, 4096, %s311_s22, [#allocation4], %s1574_s16, %s1574_s16, %s1575_s17  }
  0x24   : > { %s1528_s28 = scalar_lea.hbm %s1807_s5, 4096 }
  0x25   : > { %p1529_p6 = scmp.ne.s32.totalorder %s1807_s5, %s1528_s28  ;;  %p1535_p8 = scmp.lt.u32.totalorder %s1528_s28, %s1807_s5 }
  0x27   : > { %p1531_p2 = pnand %p1529_p6, %p1502_p7 }
  0x29   : > { %p1532_p3 = pneg %p1531_p2 }
  0x2b   : > { %p1537_p9 = pnand %p1535_p8, %p1532_p3 }
  0x2d   : > { %1540 = shalt.err (!%p1537_p9)
}
  0x2e   : > { %s1541_s22 = scalar_lea.vmem %s1668_s25, 4096  ;;  %p1549_p13 = scmp.lt.s32.totalorder %s1668_s25, %s1668_s25 }
  0x2f   : > { %p1542_p10 = scmp.ne.s32.totalorder %s1668_s25, %s1541_s22  ;;  %p1550_p0 = scmp.lt.s32.totalorder %s1541_s22, %s1541_s22 }
  0x31   : > { %p1544_p11 = pnand %p1542_p10, %p1502_p7  ;;  %p1551_p1 = por %p1550_p0, %p1549_p13 }
  0x33   : > { %p1545_p12 = pneg %p1544_p11 }
  0x35   : > { %p1552_p4 = pnand %p1551_p1, %p1545_p12 }
  0x37   : > { %1555 = shalt.err (!%p1552_p4)
}
  0x38   : > { %1373 = dma.hbm_to_vmem [thread:$0]  (!%p1664_p5), %s1807_s5, 4096, %s1668_s25, [#allocation6], %s1574_s16, %s1574_s16, %s1575_s17  }
  0x39   : > { %p1820_p6 = scmp.ne.s32.totalorder %s1817_s10, 0 }
  0x3a   : > { %p1821_p2 = scmp.ne.s32.totalorder (!%p1820_p6), %s1818_s23, 0 }
  0x3b   : > { %366 = sbr.rel (%p1820_p6) target bundleno = 1115 (0x45b), region = 64 }
  0x42   : > { %1561 = dma.done.wait (%p1821_p2), [#allocation4], 4096  }
  0x43   : > { %1563 = vsyncadd (%p1821_p2), [#allocation4], 4294963200 }
  0x44   : > { %1565 = dma.done.wait (%p1821_p2), [#allocation6], 4096  }
  0x45   : > { %1567 = vsyncadd (%p1821_p2), [#allocation6], 4294963200  ;;  %s1246_s26 = sshll.u32 %s1237_s20, 1  ;;  %v1576_v1 = vmov 0   ;;  %v1393_v2 = vld [vmem:[%s1803_s1 + $0x4] ss:$8 sps:$4 sm:$0xff]  }
  0x46   : > { %486 = vmatprep.mubr.bf16.mxu0 %v1576_v1  ;;  %p411_p5 = scmp.lt.s32.totalorder %s1246_s26, 3  ;;  %v1395_v3 = vld [vmem:[%s1803_s1] ss:$8 sps:$4 sm:$0xff]   ;;  %454 = vmatprep.subr.bf16.mxu0 %v1393_v2  ;;  %vm450_vm0 = vcmask 130048   ;;  %v1401_v10 = vld [vmem:[#allocation3 + $0x10] ss:$8 sps:$4 sm:$0xff]   ;;  %v430_v1 = vlaneseq }
  0x47   : > { %v1396_v7 = vld [vmem:[#allocation3 + $0x4] ss:$8 sps:$4 sm:$0xff]   ;;  %455 = vmatpush1.bf16.msra.mxu0 %v1395_v3  ;;  %v1398_v8 = vld [vmem:[#allocation3] ss:$8 sps:$4 sm:$0xff]   ;;  %v1399_v9 = vld [vmem:[#allocation3 + $0x14] ss:$8 sps:$4 sm:$0xff]  }
  0x48   : > { %s1823_s26 = smov (!%p411_p5, %s1246_s26), 3  ;;  %707 = vmatprep.subr.bf16.mxu1 %v1396_v7  ;;  %v1402_v11 = vld [vmem:[#allocation3 + $0x24] ss:$8 sps:$4 sm:$0xff]   ;;  %v1404_v12 = vld [vmem:[#allocation3 + $0x20] ss:$8 sps:$4 sm:$0xff]   ;;  %v431_v2 = vshrl.u32 %v430_v1, 7 }
  0x49   : > { %s1247_s10 = sshll.u32 %s1823_s26, 3  ;;  %708 = vmatpush1.bf16.msra.mxu1 %v1398_v8  ;;  %v1405_v13 = vld [vmem:[#allocation3 + $0x34] ss:$8 sps:$4 sm:$0xff]   ;;  %v1407_v14 = vld [vmem:[#allocation3 + $0x30] ss:$8 sps:$4 sm:$0xff]   ;;  %vm1578_vm1 = vmmov 0  }
  0x4a   : > { %s414_s17 = scalar_lea.vmem %s1802_s0, %s1247_s10  ;;  %709 = vmatprep.subr.bf16.mxu1 %v1399_v9  ;;  %v1408_v15 = vld [vmem:[#allocation3 + $0x44] ss:$8 sps:$4 sm:$0xff]   ;;  %v1410_v16 = vld [vmem:[#allocation3 + $0x40] ss:$8 sps:$4 sm:$0xff]   ;;  %v1411_v17 = vld [vmem:[#allocation3 + $0x54] ss:$8 sps:$4 sm:$0xff]   ;;  %s420_s16 = scalar_lea.vmem %s1813_s11, %s1247_s10 }
  0x4b   : > { %v423_v4 = vld [vmem:[%s414_s17] sm:$0xff]  ;;  %v424_v5 = vld [vmem:[%s414_s17 + $0x8] sm:$0xff]  ;;  %v1413_v18 = vld [vmem:[#allocation3 + $0x50] ss:$8 sps:$4 sm:$0xff]   ;;  %v1744_v3 = vsub.s32 1, %v431_v2  ;;  %vm1140_vm3 = vcmask 531456  }
  0x4c   : > { %v425_v6 = vpack.c.bf16 %v424_v5, %v423_v4  ;;  %v1414_v19 = vld [vmem:[#allocation3 + $0x64] ss:$8 sps:$4 sm:$0xff]   ;;  %v1416_v20 = vld [vmem:[#allocation3 + $0x60] ss:$8 sps:$4 sm:$0xff]   ;;  %v1417_v21 = vld [vmem:[#allocation3 + $0x74] ss:$8 sps:$4 sm:$0xff]  }
  0x4d   : > { %710 = vmatpush1.bf16.msra.mxu1 %v1401_v10  ;;  %v1419_v22 = vld [vmem:[#allocation3 + $0x70] ss:$8 sps:$4 sm:$0xff]   ;;  %v1420_v23 = vld [vmem:[#allocation3 + $0x84] ss:$8 sps:$4 sm:$0xff]   ;;  %v1422_v24 = vld [vmem:[#allocation3 + $0x80] ss:$8 sps:$4 sm:$0xff]  }
  0x4e   : > { %1252 = vmatmul.mubr.msk.bf16.vlgmr.msra.gmra.mrb[0].mxu0 %vm450_vm0, %v425_v6  ;;  %711 = vmatprep.subr.bf16.mxu1 %v1402_v11  ;;  %v1423_v25 = vld [vmem:[#allocation3 + $0x94] ss:$8 sps:$4 sm:$0xff]   ;;  %v1425_v26 = vld [vmem:[#allocation3 + $0x90] ss:$8 sps:$4 sm:$0xff]   ;;  %v1426_v27 = vld [vmem:[#allocation3 + $0xa4] ss:$8 sps:$4 sm:$0xff]  }
  0x4f   : > { %v1428_v28 = vld [vmem:[#allocation3 + $0xa0] ss:$8 sps:$4 sm:$0xff]   ;;  %v1429_v29 = vld [vmem:[#allocation3 + $0xb4] ss:$8 sps:$4 sm:$0xff]   ;;  %v1431_v30 = vld [vmem:[#allocation3 + $0xb0] ss:$8 sps:$4 sm:$0xff]  }
  0x50   : > { %v1432_v31 = vld [vmem:[#allocation3 + $0xc4] ss:$8 sps:$4 sm:$0xff]   ;;  %v1434_v32 = vld [vmem:[#allocation3 + $0xc0] ss:$8 sps:$4 sm:$0xff]   ;;  %v1435_v33 = vld [vmem:[#allocation3 + $0xd4] ss:$8 sps:$4 sm:$0xff]  }
  0x51   : > { %712 = vmatpush1.bf16.msra.mxu1 %v1404_v12  ;;  %v1437_v34 = vld [vmem:[#allocation3 + $0xd0] ss:$8 sps:$4 sm:$0xff]   ;;  %v1438_v35 = vld [vmem:[#allocation3 + $0xe4] ss:$8 sps:$4 sm:$0xff]   ;;  %v1440_v36 = vld [vmem:[#allocation3 + $0xe0] ss:$8 sps:$4 sm:$0xff]  }
  0x52   : > { %713 = vmatprep.subr.bf16.mxu1 %v1405_v13  ;;  %v1441_v37 = vld [vmem:[#allocation3 + $0xf4] ss:$8 sps:$4 sm:$0xff]   ;;  %v1443_v38 = vld [vmem:[#allocation3 + $0xf0] ss:$8 sps:$4 sm:$0xff]   ;;  %v1444_v39 = vld [vmem:[#allocation5] ss:$8 sps:$4 sm:$0xff]  }
  0x53   : > { %v1446_v40 = vld [vmem:[#allocation5 + $0x4] ss:$8 sps:$4 sm:$0xff]   ;;  %v1449_v41 = vld [vmem:[#allocation5 + $0x14] ss:$8 sps:$4 sm:$0xff]   ;;  %v1447_v42 = vld [vmem:[#allocation5 + $0x10] ss:$8 sps:$4 sm:$0xff]  }
  0x54   : > { %964 = vmatprep.subr.bf16.mxu0 %v1446_v40  ;;  %v1452_v43 = vld [vmem:[#allocation5 + $0x24] ss:$8 sps:$4 sm:$0xff]   ;;  %v1450_v44 = vld [vmem:[#allocation5 + $0x20] ss:$8 sps:$4 sm:$0xff]   ;;  %v1455_v45 = vld [vmem:[#allocation5 + $0x34] ss:$8 sps:$4 sm:$0xff]  }
  0x55   : > { %714 = vmatpush1.bf16.msra.mxu1 %v1407_v14  ;;  %965 = vmatpush1.bf16.msra.mxu0 %v1444_v39  ;;  %v1453_v46 = vld [vmem:[#allocation5 + $0x30] ss:$8 sps:$4 sm:$0xff]   ;;  %v1458_v47 = vld [vmem:[#allocation5 + $0x44] ss:$8 sps:$4 sm:$0xff]   ;;  %v1456_v48 = vld [vmem:[#allocation5 + $0x40] ss:$8 sps:$4 sm:$0xff]  }
  0x56   : > { %715 = vmatprep.subr.bf16.mxu1 %v1408_v15  ;;  %966 = vmatprep.subr.bf16.mxu0 %v1449_v41  ;;  %v1461_v49 = vld [vmem:[#allocation5 + $0x54] ss:$8 sps:$4 sm:$0xff]   ;;  %v1459_v50 = vld [vmem:[#allocation5 + $0x50] ss:$8 sps:$4 sm:$0xff]   ;;  %v1464_v51 = vld [vmem:[#allocation5 + $0x64] ss:$8 sps:$4 sm:$0xff]  }
  0x57   : > { %v1462_v52 = vld [vmem:[#allocation5 + $0x60] ss:$8 sps:$4 sm:$0xff]   ;;  %v1467_v53 = vld [vmem:[#allocation5 + $0x74] ss:$8 sps:$4 sm:$0xff]   ;;  %v1465_v54 = vld [vmem:[#allocation5 + $0x70] ss:$8 sps:$4 sm:$0xff]  }
  0x58   : > { %v1470_v55 = vld [vmem:[#allocation5 + $0x84] ss:$8 sps:$4 sm:$0xff]   ;;  %v1468_v56 = vld [vmem:[#allocation5 + $0x80] ss:$8 sps:$4 sm:$0xff]   ;;  %v1473_v57 = vld [vmem:[#allocation5 + $0x94] ss:$8 sps:$4 sm:$0xff]  }
  0x59   : > { %716 = vmatpush1.bf16.msra.mxu1 %v1410_v16  ;;  %967 = vmatpush1.bf16.msra.mxu0 %v1447_v42  ;;  %v1471_v58 = vld [vmem:[#allocation5 + $0x90] ss:$8 sps:$4 sm:$0xff]   ;;  %v1476_v59 = vld [vmem:[#allocation5 + $0xa4] ss:$8 sps:$4 sm:$0xff]   ;;  %v1474_v60 = vld [vmem:[#allocation5 + $0xa0] ss:$8 sps:$4 sm:$0xff]  }
  0x5a   : > { %717 = vmatprep.subr.bf16.mxu1 %v1411_v17  ;;  %968 = vmatprep.subr.bf16.mxu0 %v1452_v43  ;;  %v1479_v61 = vld [vmem:[#allocation5 + $0xb4] ss:$8 sps:$4 sm:$0xff]   ;;  %v1477_v62 = vld [vmem:[#allocation5 + $0xb0] ss:$8 sps:$4 sm:$0xff]   ;;  %v1482_v63 = vld [vmem:[#allocation5 + $0xc4] ss:$8 sps:$4 sm:$0xff]  }
  0x5b   : > { %v1480_v0 = vld [vmem:[#allocation5 + $0xc0] ss:$8 sps:$4 sm:$0xff]   ;;  %v1749_v5 = vsub.s32 0, %v431_v2  ;;  %vm1156_vm4 = vcmask 7168  }
  0x5c   : > { %v428_v4 = vld [vmem:[%s1804_s2] sm:$0x3] }
  0x5d   : > { %718 = vmatpush1.bf16.msra.mxu1 %v1413_v18  ;;  %969 = vmatpush1.bf16.msra.mxu0 %v1450_v44  ;;  %v437_v6 = vrot.slane %v428_v4, %v1744_v3  ;;  %v433_v7 = vrot.slane %v428_v4, %v1749_v5 }
  0x5e   : > { %719 = vmatprep.subr.bf16.mxu1 %v1414_v19  ;;  %970 = vmatprep.subr.bf16.mxu0 %v1455_v45 }
  0x61   : > { %720 = vmatpush1.bf16.msra.mxu1 %v1416_v20  ;;  %971 = vmatpush1.bf16.msra.mxu0 %v1453_v46 }
  0x62   : > { %721 = vmatprep.subr.bf16.mxu1 %v1417_v21  ;;  %972 = vmatprep.subr.bf16.mxu0 %v1458_v47 }
  0x65   : > { %722 = vmatpush1.bf16.msra.mxu1 %v1419_v22  ;;  %973 = vmatpush1.bf16.msra.mxu0 %v1456_v48  ;;  %v1485_v22 = vld [vmem:[#allocation5 + $0xd4] ss:$8 sps:$4 sm:$0xff]  }
  0x66   : > { %723 = vmatprep.subr.bf16.mxu1 %v1420_v23  ;;  %974 = vmatprep.subr.bf16.mxu0 %v1461_v49  ;;  %v1483_v23 = vld [vmem:[#allocation5 + $0xd0] ss:$8 sps:$4 sm:$0xff]  }
  0x69   : > { %724 = vmatpush1.bf16.msra.mxu1 %v1422_v24  ;;  %975 = vmatpush1.bf16.msra.mxu0 %v1459_v50  ;;  %v1488_v24 = vld [vmem:[#allocation5 + $0xe4] ss:$8 sps:$4 sm:$0xff]  }
  0x6a   : > { %725 = vmatprep.subr.bf16.mxu1 %v1423_v25  ;;  %976 = vmatprep.subr.bf16.mxu0 %v1464_v51  ;;  %v1486_v25 = vld [vmem:[#allocation5 + $0xe0] ss:$8 sps:$4 sm:$0xff]  }
  0x6d   : > { %726 = vmatpush1.bf16.msra.mxu1 %v1425_v26  ;;  %977 = vmatpush1.bf16.msra.mxu0 %v1462_v52  ;;  %v1491_v26 = vld [vmem:[#allocation5 + $0xf4] ss:$8 sps:$4 sm:$0xff]  }
  0x6e   : > { %727 = vmatprep.subr.bf16.mxu1 %v1426_v27  ;;  %978 = vmatprep.subr.bf16.mxu0 %v1467_v53  ;;  %v1489_v27 = vld [vmem:[#allocation5 + $0xf0] ss:$8 sps:$4 sm:$0xff]  }
  0x71   : > { %728 = vmatpush1.bf16.msra.mxu1 %v1428_v28  ;;  %979 = vmatpush1.bf16.msra.mxu0 %v1465_v54  ;;  %v1492_v28 = vld [vmem:[%s1809_s7] sm:$0xff]  }
  0x72   : > { %729 = vmatprep.subr.bf16.mxu1 %v1429_v29  ;;  %980 = vmatprep.subr.bf16.mxu0 %v1470_v55  ;;  %v1577_v29 = vmov 0.0   ;;  %v1497_v55 = vld [vmem:[%s1809_s7 + $0x28] sm:$0xff]  }
  0x75   : > { %730 = vmatpush1.bf16.msra.mxu1 %v1431_v30  ;;  %981 = vmatpush1.bf16.msra.mxu0 %v1468_v56  ;;  %v1493_v30 = vld [vmem:[%s1809_s7 + $0x8] sm:$0xff]   ;;  %v1498_v56 = vld [vmem:[%s1809_s7 + $0x30] sm:$0xff]  }
  0x76   : > { %731 = vmatprep.subr.bf16.mxu1 %v1432_v31  ;;  %982 = vmatprep.subr.bf16.mxu0 %v1473_v57  ;;  %v1494_v31 = vld [vmem:[%s1809_s7 + $0x10] sm:$0xff]   ;;  %v1499_v57 = vld [vmem:[%s1809_s7 + $0x38] sm:$0xff]  }
  0x79   : > { %732 = vmatpush1.bf16.msra.mxu1 %v1434_v32  ;;  %983 = vmatpush1.bf16.msra.mxu0 %v1471_v58  ;;  %v1495_v32 = vld [vmem:[%s1809_s7 + $0x18] sm:$0xff]   ;;  %v792_v58 = vld [vmem:[%s1808_s6] sm:$0x3] }
  0x7a   : > { %733 = vmatprep.subr.bf16.mxu1 %v1435_v33  ;;  %984 = vmatprep.subr.bf16.mxu0 %v1476_v59  ;;  %v1496_v33 = vld [vmem:[%s1809_s7 + $0x20] sm:$0xff]   ;;  %v797_v59 = vrot.slane %v792_v58, %v1749_v5 }
  0x7d   : > { %734 = vmatpush1.bf16.msra.mxu1 %v1437_v34  ;;  %985 = vmatpush1.bf16.msra.mxu0 %v1474_v60  ;;  %v535_v34 = vld [vmem:[%s1806_s4] sm:$0x3]  ;;  %v801_v60 = vrot.slane %v792_v58, %v1744_v3 }
  0x7e   : > { %735 = vmatprep.subr.bf16.mxu1 %v1438_v35  ;;  %986 = vmatprep.subr.bf16.mxu0 %v1479_v61  ;;  %v540_v35 = vrot.slane %v535_v34, %v1749_v5  ;;  %v1317_v5 = vld [vmem:[%s1810_s8] ss:$0 sm:$0xff] }
  0x81   : > { %736 = vmatpush1.bf16.msra.mxu1 %v1440_v36  ;;  %987 = vmatpush1.bf16.msra.mxu0 %v1477_v62  ;;  %v544_v36 = vrot.slane %v535_v34, %v1744_v3  ;;  %v1125_v3 = vand.u32 127, %v430_v1 }
  0x82   : > { %737 = vmatprep.subr.bf16.mxu1 %v1441_v37  ;;  %988 = vmatprep.subr.bf16.mxu0 %v1482_v63 }
  0x83   : > { %vm1126_vm2 = vcmp.lt.s32.totalorder %v1125_v3, 64 }
  0x85   : > { %738 = vmatpush1.bf16.msra.mxu1 %v1443_v38  ;;  %989 = vmatpush1.bf16.msra.mxu0 %v1480_v0 }
  0x86   : > { %990 = vmatprep.subr.bf16.mxu0 %v1485_v22  ;;  %1339 = vmatprep.subr.bf16.mxu1 %v1577_v29 }
  0x89   : > { %991 = vmatpush1.bf16.msra.mxu0 %v1483_v23 }
  0x8a   : > { %992 = vmatprep.subr.bf16.mxu0 %v1488_v24 }
  0x8d   : > { %993 = vmatpush1.bf16.msra.mxu0 %v1486_v25 }
  0x8e   : > { %994 = vmatprep.subr.bf16.mxu0 %v1491_v26 }
  0x91   : > { %995 = vmatpush1.bf16.msra.mxu0 %v1489_v27  ;;  %v1327_v27 = vld [vmem:[#allocation2] ss:$0 sm:$0xff] }
 0x121   : > { %v488_v8 = vpop.f32.mrb[0].mxu0 }
 0x122   : > { %v490_v9 = vpop.f32.mrb[1].mxu0  ;;  %v489_v12 = vadd.f32 %v488_v8, %v433_v7 }
 0x123   : > { %v491_v10 = vadd.f32 %v490_v9, %v437_v6  ;;  %v492_v11 = vpop.f32.mrb[2].mxu0 }
 0x124   : > { %v493_v13 = vadd.f32 %v492_v11, %v433_v7  ;;  %v494_v14 = vpop.f32.mrb[3].mxu0  ;;  %v497_v19 = vmax.f32 %v489_v12, 0.0 }
 0x125   : > { %v495_v15 = vadd.f32 %v494_v14, %v437_v6  ;;  %v498_v17 = vmax.f32 %v491_v10, 0.0 }
 0x126   : > { %v499_v16 = vmax.f32 %v493_v13, 0.0 }
 0x127   : > { %v500_v18 = vmax.f32 %v495_v15, 0.0 }
 0x128   : > { %v501_v21 = vpack.c.bf16 %v499_v16, %v497_v19 }
 0x129   : > { %v502_v20 = vpack.c.bf16 %v500_v18, %v498_v17 }
 0x12b   : > { %739 = vmatprep.mubr.bf16.mxu1 %v502_v20  ;;  %v1326_v20 = vld [vmem:[%s1811_s9] ss:$0 sm:$0xff] }
 0x12c   : > { %740 = vmatmul.mubr.bf16.vlgmr.msra.gmra.mrb[0].mxu1 %v501_v21 }
 0x12d   : > { %1340 = vmatpush3.bf16.msra.mxu1 %v1492_v28  ;;  %1355 = vmatprep.mubr.msk.bf16.mxu1 %vm1578_vm1, %v1577_v29 }
 0x12e   : > { %1341 = vmatprep.subr.bf16.mxu1 %v1577_v29 }
 0x131   : > { %1342 = vmatpush3.bf16.msra.mxu1 %v1493_v30 }
 0x132   : > { %1343 = vmatprep.subr.bf16.mxu1 %v1577_v29 }
 0x135   : > { %1344 = vmatpush3.bf16.msra.mxu1 %v1494_v31 }
 0x136   : > { %1345 = vmatprep.subr.bf16.mxu1 %v1577_v29 }
 0x139   : > { %1346 = vmatpush3.bf16.msra.mxu1 %v1495_v32 }
 0x13a   : > { %1347 = vmatprep.subr.bf16.mxu1 %v1577_v29 }
 0x13d   : > { %1348 = vmatpush3.bf16.msra.mxu1 %v1496_v33 }
 0x13e   : > { %1349 = vmatprep.subr.bf16.mxu1 %v1577_v29 }
 0x141   : > { %1350 = vmatpush3.bf16.msra.mxu1 %v1497_v55 }
 0x142   : > { %1351 = vmatprep.subr.bf16.mxu1 %v1577_v29 }
 0x145   : > { %1352 = vmatpush3.bf16.msra.mxu1 %v1498_v56 }
 0x146   : > { %1353 = vmatprep.subr.bf16.mxu1 %v1577_v29 }
 0x149   : > { %1354 = vmatpush3.bf16.msra.mxu1 %v1499_v57 }
 0x1ff   : > { %v741_v37 = vpop.f32.mrb[0].mxu1 }
 0x200   : > { %v742_v38 = vadd.f32 %v741_v37, %v540_v35  ;;  %v743_v39 = vpop.f32.mrb[1].mxu1 }
 0x201   : > { %v744_v40 = vadd.f32 %v743_v39, %v544_v36  ;;  %v745_v41 = vpop.f32.mrb[2].mxu1 }
 0x202   : > { %v750_v42 = vmax.f32 %v742_v38, 0.0  ;;  %v746_v43 = vadd.f32 %v745_v41, %v540_v35  ;;  %v747_v44 = vpop.f32.mrb[3].mxu1 }
 0x203   : > { %v751_v45 = vmax.f32 %v744_v40, 0.0  ;;  %v748_v46 = vadd.f32 %v747_v44, %v544_v36 }
 0x204   : > { %v752_v47 = vmax.f32 %v746_v43, 0.0  ;;  %v754_v49 = vadd.f32 %v750_v42, %v497_v19 }
 0x205   : > { %v753_v48 = vmax.f32 %v748_v46, 0.0  ;;  %v755_v51 = vadd.f32 %v751_v45, %v498_v17 }
 0x206   : > { %v756_v50 = vadd.f32 %v752_v47, %v499_v16 }
 0x207   : > { %v757_v52 = vadd.f32 %v753_v48, %v500_v18 }
 0x208   : > { %v758_v53 = vpack.c.bf16 %v756_v50, %v754_v49 }
 0x209   : > { %v759_v54 = vpack.c.bf16 %v757_v52, %v755_v51 }
 0x20b   : > { %996 = vmatprep.mubr.bf16.mxu0 %v759_v54 }
 0x20c   : > { %997 = vmatmul.mubr.bf16.vlgmr.msra.gmra.mrb[4].mxu0 %v758_v53 }
 0x2df   : > { %v998_v61 = vpop.f32.mrb[4].mxu0 }
 0x2e0   : > { %v999_v62 = vadd.f32 %v998_v61, %v797_v59  ;;  %v1000_v63 = vpop.f32.mrb[5].mxu0 }
 0x2e1   : > { %v1001_v0 = vadd.f32 %v1000_v63, %v801_v60  ;;  %v1002_v2 = vpop.f32.mrb[6].mxu0 }
 0x2e2   : > { %v1007_v4 = vmax.f32 %v999_v62, 0.0  ;;  %v1003_v6 = vadd.f32 %v1002_v2, %v797_v59  ;;  %v1004_v7 = vpop.f32.mrb[7].mxu0 }
 0x2e3   : > { %v1005_v8 = vadd.f32 %v1004_v7, %v801_v60 }
 0x2e4   : > { %v1009_v9 = vadd.f32 %v1007_v4, %v1001_v0  ;;  %v1008_v10 = vmax.f32 %v1003_v6, 0.0 }
 0x2e6   : > { %v1010_v11 = vadd.f32 %v1008_v10, %v1005_v8 }
 0x2e8   : > { %v1011_v12 = vpack.c.bf16 %v1010_v11, %v1009_v9 }
 0x2ea   : > { %1356 = vmatmul.mubr.bf16.vlgmr.msra.gmra.mrb[4].mxu1 %v1011_v12 }
 0x3bd   : > { %v1117_v13 = vpop.f32.mrb[4].mxu1 }
 0x3be   : > { %v1118_v14 = vadd.f32 %v1317_v5, %v1117_v13  ;;  %v1357_v15 = vpop.f32.mrb[5].mxu1 }
 0x3bf   : > { %v1120_v16 = vpop.f32.mrb[6].mxu1 }
 0x3c0   : > { %v1127_v17 = vmax.f32 %v1118_v14, 0.0  ;;  %v1121_v18 = vadd.f32 %v1317_v5, %v1120_v16  ;;  %v1358_v19 = vpop.f32.mrb[7].mxu1 }
 0x3c2   : > { %v1128_v21 = vmax.f32 %v1121_v18, 0.0  ;;  %v1129_v22 = vsel %vm1126_vm2, %v1127_v17, %v1118_v14 }
 0x3c3   : > { %v1138_v23 = vmul.f32 %v1326_v20, %v1129_v22 }
 0x3c4   : > { %v1130_v24 = vsel %vm1126_vm2, %v1128_v21, %v1121_v18 }
 0x3c5   : > { %v1141_v25 = vsel %vm1140_vm3, %v1138_v23, 0.0  ;;  %v1139_v1 = vmul.f32 %v1326_v20, %v1130_v24 }
 0x3c6   : > { %1142 = vadd.xlane.f32.xlu0 %v1141_v25 }
 0x3c7   : > { %v1144_v26 = vsel %vm1140_vm3, %v1139_v1, 0.0 }
 0x3ca   : > { %1145 = vadd.xlane.f32.xlu0 %v1144_v26 }
 0x453   : > { %v1143_v28 = vpop.xlane.xlu0 %1142 }
 0x454   : > { %v1154_v29 = vadd.f32 %v1327_v27, %v1143_v28 }
 0x456   : > { %1157 = vst.msk [vmem:[%s420_s16] sm:$0xff] %vm1156_vm4, %v1154_v29 }
 0x457   : > { %v1146_v30 = vpop.xlane.xlu0 %1145 }
 0x458   : > { %v1155_v31 = vadd.f32 %v1327_v27, %v1146_v30 }
 0x45a   : > { %1158 = vst.msk [vmem:[%s420_s16 + $0x8] sm:$0xff] %vm1156_vm4, %v1155_v31 }
 0x45b PF: > { %s25_s19 = sadd.s32 1, %s1570_s19  }
 0x45c   : > { %p22_p7 = scmp.ge.s32.totalorder %s25_s19, 4  }
 0x45e   :  { %24 = sbr.rel (!%p22_p7) target bundleno = 5 (0x5), region = 103 }
 0x465   :  { %1181 = vsyncpa [#allocation4], 1 }
 0x466   :  { %1183 = vsyncpa [#allocation4 + $0x1], 1 }
 0x467   :  { %1184 = vsyncpa [#allocation6], 1 }

</bundles_post_ra>
